<compile_context>
chip_gen: v7x
topology: tpu7x:2x2x1
jax: 0.10.0
libtpu: 0.0.40
codegen_flags: <defaults>
</compile_context>

<pallas_src>
import functools

import jax
import jax.numpy as jnp
from jax.experimental import pallas as pl
from jax.experimental.pallas import tpu as pltpu

_LANE = 128          # lane width; for huge backbones on v6e/v7x prefer 256
_NEG = -1e30         # finite "minus infinity" for padded class logits


def _round_up(x, m):
    return (x + m - 1) // m * m


def _pick_bt(batch):
    """Rows per grid step: as large as possible while keeping >=2 parallel
    blocks along the batch axis (v7x has 2 TensorCores)."""
    if batch <= 1:
        return 1
    cap = min(max(batch // 2, 1), 256)
    for d in range(cap, 0, -1):
        if batch % d == 0:
            return d
    return 1


def _fused_head_kernel(x_ref, w1_ref, b1_ref, wc_ref, bc_ref, out_ref,
                       *, inv_seq_len):
    """Fused mean-pool -> pooler(tanh) -> classifier -> softmax.

    Grid: (B // bt,).  Per-step refs:
      x_ref  : (bt, S, Hp) bf16  hidden states for bt batch rows
      w1_ref : (Hp, Hp)    bf16  pooler weight          (VMEM-resident)
      b1_ref : (1, Hp)     f32   pooler bias            (VMEM-resident)
      wc_ref : (Hp, Cp)    bf16  classifier weight      (VMEM-resident)
      bc_ref : (1, Cp)     f32   classifier bias, padded cols = -1e30
      out_ref: (1, bt, Cp) f32   softmax probs for these bt rows
    """
    # Mean-pool: sublane reduction over the sequence axis, accumulated in f32.
    x = x_ref[...].astype(jnp.float32)                     # (bt, S, Hp)
    pooled = jnp.sum(x, axis=1) * inv_seq_len               # (bt, Hp) f32

    # Pooler dense + tanh (MXU, bf16 feeds, f32 accumulation).
    h = jnp.dot(pooled.astype(jnp.bfloat16), w1_ref[...],
                preferred_element_type=jnp.float32) + b1_ref[...]
    h = jnp.tanh(h)                                         # (bt, Hp) f32

    # Classifier dense -> logits (padded classes carry a -1e30 bias).
    logits = jnp.dot(h.astype(jnp.bfloat16), wc_ref[...],
                     preferred_element_type=jnp.float32) + bc_ref[...]

    # Numerically-stable softmax; padded classes -> exp == 0.
    m = jnp.max(logits, axis=-1, keepdims=True)
    e = jnp.exp(logits - m)
    denom = jnp.sum(e, axis=-1, keepdims=True)
    out_ref[0] = e * pl.reciprocal(denom, approx=True)


def wrapped_backbone_model2(input_ids, params):
    """probs = softmax(backbone(input_ids).logits, axis=-1)."""
    emb, w1, b1, wc, bc = (params["emb"], params["w1"], params["b1"],
                           params["wc"], params["bc"])
    B, S = input_ids.shape
    H = emb.shape[1]
    C = wc.shape[1]

    Hp = _round_up(H, _LANE)                 # lane-dense hidden dim
    Cp = _round_up(C, _LANE)                 # lane-dense class dim
    bt = _pick_bt(B)                         # batch rows per grid step
    nb = B // bt

    # ---- glue in plain JAX: gather f32 rows, then pad + cast the small slab.
    x = emb[input_ids]                                        # (B, S, H) f32
    if Hp != H:
        x = jnp.pad(x, ((0, 0), (0, 0), (0, Hp - H)))
    x = x.astype(jnp.bfloat16)                                # (B, S, Hp)

    w1_p = jnp.pad(w1, ((0, Hp - H), (0, Hp - H))).astype(jnp.bfloat16)
    b1_p = jnp.pad(b1, ((0, 0), (0, Hp - H))).astype(jnp.float32)
    wc_p = jnp.pad(wc, ((0, Hp - H), (0, Cp - C))).astype(jnp.bfloat16)
    bc_p = jnp.pad(bc, ((0, 0), (0, Cp - C)),
                   constant_values=_NEG).astype(jnp.float32)

    # ---- VMEM budget: assume 2x buffering for every operand; cap for v7x. --
    need = 2 * (bt * S * Hp * 2                  # x slab (bf16)
                + Hp * Hp * 2 + Hp * Cp * 2      # w1 + wc (bf16, resident)
                + Hp * 4 + Cp * 4                # biases (f32, resident)
                + bt * Cp * 4)                   # output block (f32)
    need += 2 << 20                              # headroom
    vmem_limit = int(min(max(need, 16 << 20), 48 << 20))

    kernel = functools.partial(_fused_head_kernel, inv_seq_len=1.0 / S)

    grid_spec = pltpu.PrefetchScalarGridSpec(
        num_scalar_prefetch=0,
        grid=(nb,),
        in_specs=[
            pl.BlockSpec((bt, S, Hp), lambda b: (b, 0, 0)),   # x slab (streamed)
            pl.BlockSpec((Hp, Hp), lambda b: (0, 0)),         # w1 (resident)
            pl.BlockSpec((1, Hp), lambda b: (0, 0)),          # b1 (resident)
            pl.BlockSpec((Hp, Cp), lambda b: (0, 0)),         # wc (resident)
            pl.BlockSpec((1, Cp), lambda b: (0, 0)),          # bc (resident)
        ],
        out_specs=pl.BlockSpec((1, bt, Cp), lambda b: (b, 0, 0)),
    )

    probs_padded = pl.pallas_call(
        kernel,
        out_shape=jax.ShapeDtypeStruct((nb, bt, Cp), jnp.float32),
        grid_spec=grid_spec,
        compiler_params=pltpu.CompilerParams(
            dimension_semantics=("parallel",),
            vmem_limit_bytes=vmem_limit),
    )(x, w1_p, b1_p, wc_p, bc_p)

    return probs_padded.reshape(B, Cp)[:, :C]


def make_params(key, vocab=256, hidden=48, num_classes=2):
    k_emb, k_w1, k_b1, k_wc, k_bc = jax.random.split(key, 5)
    return {
        "emb": 0.02 * jax.random.normal(k_emb, (vocab, hidden), jnp.float32),
        "w1": 0.1 * jax.random.normal(k_w1, (hidden, hidden), jnp.float32),
        "b1": 0.05 * jax.random.normal(k_b1, (1, hidden), jnp.float32),
        "wc": 0.1 * jax.random.normal(k_wc, (hidden, num_classes), jnp.float32),
        "bc": 0.05 * jax.random.normal(k_bc, (1, num_classes), jnp.float32),
    }


def _reference(input_ids, params):
    x = params["emb"][input_ids]
    pooled = jnp.mean(x, axis=1)
    h = jnp.tanh(pooled @ params["w1"] + params["b1"])
    logits = h @ params["wc"] + params["bc"]
    return jax.nn.softmax(logits, axis=-1)


if __name__ == "__main__":
    # Small shapes that still exercise H/C lane padding, multi-row batch
    # blocks (bt=2, 2 parallel grid steps), and the un-padded sequence slab.
    B, S, H, V, C = 4, 60, 48, 256, 2

    key = jax.random.PRNGKey(0)
    k_ids, k_params = jax.random.split(key)
    input_ids = jax.random.randint(k_ids, (B, S), 0, V, dtype=jnp.int32)
    params = make_params(k_params, vocab=V, hidden=H, num_classes=C)

    fwd = jax.jit(wrapped_backbone_model2)
    probs = jax.block_until_ready(fwd(input_ids, params))
    ref = _reference(input_ids, params)

    assert probs.shape == (B, C)
    # bf16 MXU feeds + approximate reciprocal -> loose-but-real tolerance.
    assert jnp.allclose(probs, ref, atol=1e-2, rtol=1e-2)
    assert jnp.allclose(jnp.sum(probs, axis=-1), 1.0, atol=1e-2)

    print("KERNEL_OK")
</pallas_src>

<mosaic_0001>
module attributes {stable_mosaic.version = 11 : i64} {
  func.func @_fused_head_kernel(%arg0: i32, %arg1: memref<2x60x128xbf16, #tpu.memory_space<vmem>>, %arg2: memref<128x128xbf16, #tpu.memory_space<vmem>>, %arg3: memref<1x128xf32, #tpu.memory_space<vmem>>, %arg4: memref<128x128xbf16, #tpu.memory_space<vmem>>, %arg5: memref<1x128xf32, #tpu.memory_space<vmem>>, %arg6: memref<1x2x128xf32, #tpu.memory_space<vmem>>) attributes {dimension_semantics = [#tpu.dimension_semantics<parallel>], iteration_bounds = array<i64: 2>, scalar_prefetch = 0 : i64, scratch_operands = 0 : i64, tpu.core_type = #tpu.core_type<tc>, window_params = [{transform_indices = @transform_0, window_bounds = array<i64: 2, 60, 128>}, {pipeline_mode = #tpu.pipeline_mode<synchronous>, transform_indices = @transform_1, window_bounds = array<i64: 128, 128>}, {pipeline_mode = #tpu.pipeline_mode<synchronous>, transform_indices = @transform_2, window_bounds = array<i64: 1, 128>}, {pipeline_mode = #tpu.pipeline_mode<synchronous>, transform_indices = @transform_3, window_bounds = array<i64: 128, 128>}, {pipeline_mode = #tpu.pipeline_mode<synchronous>, transform_indices = @transform_4, window_bounds = array<i64: 1, 128>}, {transform_indices = @transform_5, window_bounds = array<i64: 1, 2, 128>}]} {
    %c0 = arith.constant 0 : index
    %c0_0 = arith.constant 0 : index
    %c0_1 = arith.constant 0 : index
    %0 = vector.load %arg1[%c0, %c0_0, %c0_1] : memref<2x60x128xbf16, #tpu.memory_space<vmem>>, vector<2x60x128xbf16>
    %1 = arith.extf %0 : vector<2x60x128xbf16> to vector<2x60x128xf32>
    %cst = arith.constant dense<0.000000e+00> : vector<2x128xf32>
    %2 = vector.multi_reduction <add>, %1, %cst [1] : vector<2x60x128xf32> to vector<2x128xf32>
    %cst_2 = arith.constant 0.0166666675 : f32
    %3 = vector.broadcast %cst_2 : f32 to vector<2x128xf32>
    %4 = arith.mulf %2, %3 : vector<2x128xf32>
    %5 = arith.truncf %4 : vector<2x128xf32> to vector<2x128xbf16>
    %c0_3 = arith.constant 0 : index
    %c0_4 = arith.constant 0 : index
    %6 = vector.load %arg2[%c0_3, %c0_4] : memref<128x128xbf16, #tpu.memory_space<vmem>>, vector<128x128xbf16>
    %cst_5 = arith.constant dense<0.000000e+00> : vector<2x128xf32>
    %7 = tpu.matmul %5, %6, %cst_5 {dimension_numbers = #tpu.dot_dimension_numbers<[1], [0], [0], [1], [0, 0, 1, 1], [], []>} : vector<2x128xbf16>, vector<128x128xbf16>, vector<2x128xf32> -> vector<2x128xf32>
    %c0_6 = arith.constant 0 : index
    %c0_7 = arith.constant 0 : index
    %8 = vector.load %arg3[%c0_6, %c0_7] : memref<1x128xf32, #tpu.memory_space<vmem>>, vector<1x128xf32>
    %9 = vector.broadcast %8 : vector<1x128xf32> to vector<2x128xf32>
    %10 = arith.addf %7, %9 : vector<2x128xf32>
    %11 = math.tanh %10 : vector<2x128xf32>
    %12 = arith.truncf %11 : vector<2x128xf32> to vector<2x128xbf16>
    %c0_8 = arith.constant 0 : index
    %c0_9 = arith.constant 0 : index
    %13 = vector.load %arg4[%c0_8, %c0_9] : memref<128x128xbf16, #tpu.memory_space<vmem>>, vector<128x128xbf16>
    %cst_10 = arith.constant dense<0.000000e+00> : vector<2x128xf32>
    %14 = tpu.matmul %12, %13, %cst_10 {dimension_numbers = #tpu.dot_dimension_numbers<[1], [0], [0], [1], [0, 0, 1, 1], [], []>} : vector<2x128xbf16>, vector<128x128xbf16>, vector<2x128xf32> -> vector<2x128xf32>
    %c0_11 = arith.constant 0 : index
    %c0_12 = arith.constant 0 : index
    %15 = vector.load %arg5[%c0_11, %c0_12] : memref<1x128xf32, #tpu.memory_space<vmem>>, vector<1x128xf32>
    %16 = vector.broadcast %15 : vector<1x128xf32> to vector<2x128xf32>
    %17 = arith.addf %14, %16 : vector<2x128xf32>
    %cst_13 = arith.constant dense<0xFF800000> : vector<2xf32>
    %18 = vector.multi_reduction <maximumf>, %17, %cst_13 [1] : vector<2x128xf32> to vector<2xf32>
    %19 = vector.shape_cast %18 : vector<2xf32> to vector<2x1xf32>
    %20 = vector.broadcast %19 : vector<2x1xf32> to vector<2x128xf32>
    %21 = arith.subf %17, %20 : vector<2x128xf32>
    %22 = math.exp %21 : vector<2x128xf32>
    %cst_14 = arith.constant dense<0.000000e+00> : vector<2xf32>
    %23 = vector.multi_reduction <add>, %22, %cst_14 [1] : vector<2x128xf32> to vector<2xf32>
    %24 = vector.shape_cast %23 : vector<2xf32> to vector<2x1xf32>
    %25 = tpu.reciprocal %24 {approx = true} : vector<2x1xf32> -> vector<2x1xf32>
    %26 = vector.broadcast %25 : vector<2x1xf32> to vector<2x128xf32>
    %27 = arith.mulf %22, %26 : vector<2x128xf32>
    %c0_15 = arith.constant 0 : index
    %c0_16 = arith.constant 0 : index
    %c0_17 = arith.constant 0 : index
    %28 = vector.load %arg6[%c0_15, %c0_16, %c0_17] : memref<1x2x128xf32, #tpu.memory_space<vmem>>, vector<1x2x128xf32>
    %29 = vector.shape_cast %28 : vector<1x2x128xf32> to vector<2x128xf32>
    %30 = vector.shape_cast %27 : vector<2x128xf32> to vector<1x2x128xf32>
    tpu.vector_store %arg6[%c0_15, %c0_16, %c0_17], %30 {strides = array<i32>} : memref<1x2x128xf32, #tpu.memory_space<vmem>>, vector<1x2x128xf32>,
    return
  }
  func.func @transform_0(%arg0: i32) -> (i32, i32, i32) {
    %c0_i32 = arith.constant 0 : i32
    %c0_i32_0 = arith.constant 0 : i32
    %c0_i32_1 = arith.constant 0 : i32
    return %arg0, %c0_i32, %c0_i32_0 : i32, i32, i32
  }
  func.func @transform_1(%arg0: i32) -> (i32, i32) {
    %c0_i32 = arith.constant 0 : i32
    %c0_i32_0 = arith.constant 0 : i32
    %c0_i32_1 = arith.constant 0 : i32
    return %c0_i32, %c0_i32_0 : i32, i32
  }
  func.func @transform_2(%arg0: i32) -> (i32, i32) {
    %c0_i32 = arith.constant 0 : i32
    %c0_i32_0 = arith.constant 0 : i32
    %c0_i32_1 = arith.constant 0 : i32
    return %c0_i32, %c0_i32_0 : i32, i32
  }
  func.func @transform_3(%arg0: i32) -> (i32, i32) {
    %c0_i32 = arith.constant 0 : i32
    %c0_i32_0 = arith.constant 0 : i32
    %c0_i32_1 = arith.constant 0 : i32
    return %c0_i32, %c0_i32_0 : i32, i32
  }
  func.func @transform_4(%arg0: i32) -> (i32, i32) {
    %c0_i32 = arith.constant 0 : i32
    %c0_i32_0 = arith.constant 0 : i32
    %c0_i32_1 = arith.constant 0 : i32
    return %c0_i32, %c0_i32_0 : i32, i32
  }
  func.func @transform_5(%arg0: i32) -> (i32, i32, i32) {
    %c0_i32 = arith.constant 0 : i32
    %c0_i32_0 = arith.constant 0 : i32
    %c0_i32_1 = arith.constant 0 : i32
    return %arg0, %c0_i32, %c0_i32_0 : i32, i32, i32
  }
}

</mosaic_0001>

<bundles_post_ra>
// kernel: wrapped_backbone_model2.1
= control target key start
LH: loop header
LB: loop body
LE: loop exit
PB: predicated region body
PF: predicated region fallthrough
CT: control target
= control target key end

     0   :  { %s781_s18 = smov 0   ;;  %s875_s0 = inlined_call_operand.vmem [shape: bf16[4,60,128], index: 0, kind: input, shape index: {}]   ;;  %s876_s1 = inlined_call_operand.vmem [shape: bf16[128,128], index: 1, kind: input, shape index: {}]   ;;  %s877_s2 = inlined_call_operand.vmem [shape: f32[1,128], index: 2, kind: input, shape index: {}]   ;;  %s878_s3 = inlined_call_operand.vmem [shape: bf16[128,128], index: 3, kind: input, shape index: {}]   ;;  %s879_s4 = inlined_call_operand.vmem [shape: f32[1,128], index: 4, kind: input, shape index: {}]   ;;  %s880_s5 = inlined_call_operand.vmem [shape: f32[2,2,128], index: 5, kind: output, shape index: {}]  }
   0x1 LB: > { %s787_s19 = sadd.s32 4294967295, %s747_s18   ;;  %p596_p0 = scmp.ge.s32.totalorder %s747_s18, 1  ;;  %s747_s18 = sphi %s781_s18, %s15_s18  }
   0x2   : > { %p189_p1 = scmp.lt.s32.totalorder %s747_s18, 3 }
   0x4   : > { %p190_p2 = pnand %p596_p0, %p189_p1 }
   0x5   : > { %v719_v0 = vld [vmem:[%s876_s1] sm:$0xff] (!%p190_p2)   ;;  %v749_v1 = vmov (!%p190_p2), 0.0   ;;  %v720_v2 = vld [vmem:[%s876_s1 + $0x8] sm:$0xff] (!%p190_p2)   ;;  %vm750_vm0 = vmmov (!%p190_p2), 0   ;;  %s597_s24 = sshll.u32 (!%p190_p2), %s787_s19, 1  ;;  %v721_v3 = vld [vmem:[%s876_s1 + $0x10] sm:$0xff] (!%p190_p2)  }
   0x6   : > { %193 = sbr.rel (%p190_p2) target bundleno = 811 (0x32b), region = 40  ;;  %669 = vmatprep.subr.bf16.mxu0 (!%p190_p2), %v749_v1  ;;  %689 = vmatprep.subr.bf16.mxu1 (!%p190_p2), %v749_v1  ;;  %p218_p3 = scmp.lt.s32.totalorder (!%p190_p2), %s597_s24, 3  ;;  %v727_v4 = vld [vmem:[%s878_s3] sm:$0xff] (!%p190_p2)   ;;  %v722_v7 = vld [vmem:[%s876_s1 + $0x18] sm:$0xff] (!%p190_p2)   ;;  %v728_v19 = vld [vmem:[%s878_s3 + $0x8] sm:$0xff] (!%p190_p2)   ;;  %vm267_vm1 = vcmask (!%p190_p2), 1043456  }
   0x7   : > { %670 = vmatpush3.bf16.msra.mxu0 (!%p190_p2), %v719_v0  ;;  %685 = vmatprep.mubr.msk.bf16.mxu0 (!%p190_p2), %vm750_vm0, %v749_v1  ;;  %v723_v15 = vld [vmem:[%s876_s1 + $0x20] sm:$0xff] (!%p190_p2)   ;;  %v729_v28 = vld [vmem:[%s878_s3 + $0x10] sm:$0xff] (!%p190_p2)   ;;  %v724_v33 = vld [vmem:[%s876_s1 + $0x28] sm:$0xff] (!%p190_p2)   ;;  %vm321_vm2 = vcmask (!%p190_p2), 1041409   ;;  %vm526_vm3 = vcmask (!%p190_p2), 1041408   ;;  %p224_p4 = scmp.lt.s32.totalorder (!%p190_p2), %s787_s19, 1 }
   0x8   : > { %671 = vmatprep.subr.bf16.mxu0 (!%p190_p2), %v749_v1  ;;  %705 = vmatprep.mubr.msk.bf16.mxu1 (!%p190_p2), %vm750_vm0, %v749_v1  ;;  %v730_v40 = vld [vmem:[%s878_s3 + $0x18] sm:$0xff] (!%p190_p2)   ;;  %v725_v45 = vld [vmem:[%s876_s1 + $0x30] sm:$0xff] (!%p190_p2)  }
   0x9   : > { %690 = vmatpush3.bf16.msra.mxu1 (!%p190_p2), %v727_v4  ;;  %v726_v52 = vld [vmem:[%s876_s1 + $0x38] sm:$0xff] (!%p190_p2)  }
   0xa   : > { %691 = vmatprep.subr.bf16.mxu1 (!%p190_p2), %v749_v1 }
   0xb   : > { %672 = vmatpush3.bf16.msra.mxu0 (!%p190_p2), %v720_v2 }
   0xc   : > { %673 = vmatprep.subr.bf16.mxu0 (!%p190_p2), %v749_v1 }
   0xd   : > { %s882_s24 = smov (!%p218_p3, %s597_s24), 3  ;;  %692 = vmatpush3.bf16.msra.mxu1 %v728_v19  ;;  %s884_s19 = smov (!%p224_p4, %s787_s19), 1 }
   0xe   : > { %s621_s27 = sshll.u32 %s882_s24, 5  ;;  %693 = vmatprep.subr.bf16.mxu1 %v749_v1  ;;  %s600_s13 = sshll.u32 %s884_s19, 1 }
   0xf   : > { %s222_s30 = scalar_lea.vmem %s875_s0, %s621_s27  ;;  %674 = vmatpush3.bf16.msra.mxu0 %v721_v3  ;;  %s227_s16 = scalar_lea.vmem %s880_s5, %s600_s13 }
  0x10   : > { %v623_v5 = vld [vmem:[%s222_s30] sm:$0xff]   ;;  %v646_v6 = vld [vmem:[%s222_s30 + $0x8] sm:$0xff]   ;;  %675 = vmatprep.subr.bf16.mxu0 %v749_v1  ;;  %v647_v11 = vld [vmem:[%s222_s30 + $0x10] sm:$0xff]  }
  0x11   : > { %v624_v8 = vunpack.c.l.bf16 %v623_v5  ;;  %v625_v9 = vunpack.c.h.bf16 %v623_v5  ;;  %v648_v10 = vld [vmem:[%s222_s30 + $0x20] sm:$0xff]   ;;  %v649_v14 = vld [vmem:[%s222_s30 + $0x28] sm:$0xff]   ;;  %v628_v16 = vunpack.c.l.bf16 %v646_v6  ;;  %v650_v18 = vld [vmem:[%s222_s30 + $0x30] sm:$0xff]   ;;  %v629_v20 = vunpack.c.h.bf16 %v646_v6  ;;  %694 = vmatpush3.bf16.msra.mxu1 %v729_v28 }
  0x12   : > { %v636_v12 = vunpack.c.l.bf16 %v648_v10  ;;  %v637_v13 = vunpack.c.h.bf16 %v648_v10  ;;  %v640_v17 = vunpack.c.l.bf16 %v649_v14  ;;  %v236_v21 = vld [vmem:[%s222_s30 + $0x1c] sm:$0x3]  ;;  %v641_v22 = vunpack.c.h.bf16 %v649_v14  ;;  %v235_v25 = vld [vmem:[%s222_s30 + $0x18] sm:$0xf]  ;;  %695 = vmatprep.subr.bf16.mxu1 %v749_v1  ;;  %v733_v14 = vld [vmem:[%s878_s3 + $0x30] sm:$0xff]  }
  0x13   : > { %676 = vmatpush3.bf16.msra.mxu0 %v722_v7  ;;  %v261_v23 = vadd.f32 %v625_v9, %v624_v8  ;;  %v243_v26 = vld [vmem:[%s222_s30 + $0x38] sm:$0xf]  ;;  %v244_v27 = vld [vmem:[%s222_s30 + $0x3c] sm:$0x3]  ;;  %v632_v29 = vunpack.c.l.bf16 %v647_v11  ;;  %v644_v30 = vunpack.c.l.bf16 %v650_v18  ;;  %v633_v34 = vunpack.c.h.bf16 %v647_v11 }
  0x14   : > { %v276_v24 = vadd.f32 %v637_v13, %v636_v12  ;;  %677 = vmatprep.subr.bf16.mxu0 %v749_v1  ;;  %v645_v35 = vunpack.c.h.bf16 %v650_v18  ;;  %v252_v38 = vunpack.c.l.bf16 %v236_v21  ;;  %v260_v39 = vunpack.c.l.bf16 %v244_v27  ;;  %v731_v12 = vld [vmem:[%s878_s3 + $0x20] sm:$0xff]   ;;  %v732_v13 = vld [vmem:[%s878_s3 + $0x28] sm:$0xff]  }
  0x15   : > { %v262_v31 = vadd.f32 %v628_v16, %v261_v23  ;;  %v251_v41 = vunpack.c.l.bf16 %v235_v25  ;;  %v259_v42 = vunpack.c.l.bf16 %v243_v26  ;;  %696 = vmatpush3.bf16.msra.mxu1 %v730_v40  ;;  %v601_v16 = vld [vmem:[%s877_s2] ss:$0 sm:$0xff] }
  0x16   : > { %v277_v32 = vadd.f32 %v640_v17, %v276_v24  ;;  %v268_v48 = vsel %vm267_vm1, %v252_v38, 0.0  ;;  %v282_v49 = vsel %vm267_vm1, %v260_v39, 0.0  ;;  %697 = vmatprep.subr.bf16.mxu1 %v749_v1 }
  0x17   : > { %678 = vmatpush3.bf16.msra.mxu0 %v723_v15  ;;  %v263_v36 = vadd.f32 %v629_v20, %v262_v31  ;;  %v734_v15 = vld [vmem:[%s878_s3 + $0x38] sm:$0xff]  }
  0x18   : > { %v278_v37 = vadd.f32 %v641_v22, %v277_v32  ;;  %679 = vmatprep.subr.bf16.mxu0 %v749_v1 }
  0x19   : > { %v264_v43 = vadd.f32 %v632_v29, %v263_v36  ;;  %698 = vmatpush3.bf16.msra.mxu1 %v731_v12 }
  0x1a   : > { %v279_v44 = vadd.f32 %v644_v30, %v278_v37  ;;  %699 = vmatprep.subr.bf16.mxu1 %v749_v1 }
  0x1b   : > { %680 = vmatpush3.bf16.msra.mxu0 %v724_v33  ;;  %v265_v46 = vadd.f32 %v633_v34, %v264_v43 }
  0x1c   : > { %v280_v47 = vadd.f32 %v645_v35, %v279_v44  ;;  %681 = vmatprep.subr.bf16.mxu0 %v749_v1 }
  0x1d   : > { %v266_v50 = vadd.f32 %v265_v46, %v251_v41  ;;  %700 = vmatpush3.bf16.msra.mxu1 %v732_v13 }
  0x1e   : > { %v281_v51 = vadd.f32 %v280_v47, %v259_v42  ;;  %701 = vmatprep.subr.bf16.mxu1 %v749_v1 }
  0x1f   : > { %682 = vmatpush3.bf16.msra.mxu0 %v725_v45  ;;  %v269_v53 = vadd.f32 %v268_v48, %v266_v50 }
  0x20   : > { %v283_v54 = vadd.f32 %v282_v49, %v281_v51  ;;  %683 = vmatprep.subr.bf16.mxu0 %v749_v1 }
  0x21   : > { %v270_v55 = vrot.slane %v269_v53, 4  ;;  %702 = vmatpush3.bf16.msra.mxu1 %v733_v14 }
  0x22   : > { %v284_v56 = vrot.slane %v283_v54, 4  ;;  %703 = vmatprep.subr.bf16.mxu1 %v749_v1  ;;  %v610_v1 = vld [vmem:[%s879_s4] ss:$0 sm:$0xff] }
  0x23   : > { %684 = vmatpush3.bf16.msra.mxu0 %v726_v52  ;;  %v271_v57 = vadd.f32 %v270_v55, %v269_v53 }
  0x24   : > { %v285_v58 = vadd.f32 %v284_v56, %v283_v54 }
  0x25   : > { %v272_v59 = vrot.slane %v271_v57, 2  ;;  %704 = vmatpush3.bf16.msra.mxu1 %v734_v15 }
  0x26   : > { %v286_v60 = vrot.slane %v285_v58, 2 }
  0x27   : > { %v273_v61 = vadd.f32 %v272_v59, %v271_v57 }
  0x28   : > { %v287_v62 = vadd.f32 %v286_v60, %v285_v58 }
  0x29   : > { %v274_v63 = vrot.slane %v273_v61, 1 }
  0x2a   : > { %v288_v0 = vrot.slane %v287_v62, 1 }
  0x2b   : > { %v275_v2 = vadd.f32 %v274_v63, %v273_v61 }
  0x2c   : > { %v289_v3 = vadd.f32 %v288_v0, %v287_v62 }
  0x2d   : > { %v290_v4 = vmul.f32 0.016666668, %v275_v2 }
  0x2e   : > { %v291_v5 = vmul.f32 0.016666668, %v289_v3 }
  0x2f   : > { %v292_v6 = vpack.c.bf16 %v290_v4, %v290_v4 }
  0x30   : > { %v293_v7 = vpack.c.bf16 %v291_v5, %v291_v5 }
  0x31   : > { %v319_v8 = vunpack.c.l.b16 %v292_v6 }
  0x32   : > { %v320_v9 = vunpack.c.l.b16 %v293_v7 }
  0x34   : > { %v322_v10 = vsel %vm321_vm2, %v320_v9, %v319_v8 }
  0x35   : > { %v323_v11 = vpack.c.b16 %v322_v10, %v322_v10 }
  0x37   : > { %686 = vmatmul.mubr.bf16.vlgmr.msra.gmra.mrb[0].mxu0 %v323_v11 }
 0x10a   : > { %v407_v17 = vpop.f32.mrb[0].mxu0 }
 0x10b   : > { %v408_v18 = vadd.f32 %v601_v16, %v407_v17  ;;  %v687_v19 = vpop.f32.mrb[1].mxu0 }
 0x10c   : > { %v410_v20 = vpop.f32.mrb[2].mxu0 }
 0x10d   : > { %735 = vtanh.f32 %v408_v18  ;;  %v688_v21 = vpop.f32.mrb[3].mxu0 }
 0x117   : > { %v736_v22 = vpop.eup %735 }
 0x118   : > { %v414_v23 = vpack.c.bf16 %v736_v22, %v736_v22 }
 0x11a   : > { %706 = vmatmul.mubr.bf16.vlgmr.msra.gmra.mrb[0].mxu1 %v414_v23 }
 0x1ed   : > { %v520_v24 = vpop.f32.mrb[0].mxu1 }
 0x1ee   : > { %v521_v25 = vadd.f32 %v610_v1, %v520_v24  ;;  %v707_v26 = vpop.f32.mrb[1].mxu1 }
 0x1ef   : > { %v523_v27 = vpop.f32.mrb[2].mxu1 }
 0x1f0   : > { %v708_v28 = vpop.f32.mrb[3].mxu1  ;;  %v527_v29 = vsel %vm526_vm3, %v521_v25, -inf }
 0x1f1   : > { %528 = vmax.xlane.f32.xlu0 %v527_v29 }
 0x27e   : > { %v529_v30 = vpop.xlane.xlu0 %528 }
 0x27f   : > { %v530_v31 = vsub.f32 %v521_v25, %v529_v30 }
 0x281   : > { %v531_v32 = vmul.f32 1.442695, %v530_v31 }
 0x283   : > { %737 = vpow2.f32 %v531_v32 }
 0x28d   : > { %v738_v33 = vpop.eup %737 }
 0x28e   : > { %v533_v34 = vsel %vm526_vm3, %v738_v33, 0.0 }
 0x28f   : > { %534 = vadd.xlane.f32.xlu0 %v533_v34 }
 0x31c   : > { %v535_v35 = vpop.xlane.xlu0 %534 }
 0x31d   : > { %739 = vrcp.f32 %v535_v35 }
 0x327   : > { %v740_v36 = vpop.eup %739 }
 0x328   : > { %v537_v37 = vmul.f32 %v740_v36, %v738_v33 }
 0x32a   : > { %538 = vst [vmem:[%s227_s16] sm:$0x3] %v537_v37 }
 0x32b PF: > { %s15_s18 = sadd.s32 1, %s747_s18  }
 0x32c   : > { %p12_p5 = scmp.ge.s32.totalorder %s15_s18, 4  }
 0x32e   :  { %14 = sbr.rel (!%p12_p5) target bundleno = 1 (0x1), region = 70 }

</bundles_post_ra>
